<compile_context>
chip_gen: v6e
topology: v6e:2x2x1
jax: 0.10.0
libtpu: 0.0.40
codegen_flags: <defaults>
</compile_context>

<pallas_src>
import functools

import jax
import jax.numpy as jnp
from jax.experimental import pallas as pl
from jax.experimental.pallas import tpu as pltpu


def sgu_kernel(res_ref, gate_ref, w_ref, b_ref, out_ref, acc_ref, *, heads):
    """One (m, k) grid step: acc[m-tile] += sum_h W[h, m-tile, k-tile] @ gate[h, k-tile]."""
    k = pl.program_id(1)
    d = gate_ref.shape[-1]            # per-head feature width
    tm = acc_ref.shape[0]

    def _fuse(parts):
        # heads == 1 -> no concat; heads > 1 -> one full-width (lane-dense) value.
        return parts[0] if len(parts) == 1 else jnp.concatenate(parts, axis=-1)

    @pl.when(k == 0)
    def _():
        # Fold the per-(head, output-row) bias into the accumulator init.
        acc_ref[...] = _fuse([
            jnp.broadcast_to(b_ref[h].astype(jnp.float32), (tm, d))
            for h in range(heads)
        ])

    # Per-head MXU matmul on this K tile (bf16 operands, f32 accumulation).
    # Heads are indexed on the leading axis (no lane slices); partials are
    # fused so the accumulator write is a single full-width store.
    acc_ref[...] += _fuse([
        jnp.dot(w_ref[h], gate_ref[h], preferred_element_type=jnp.float32)
        for h in range(heads)
    ])

    @pl.when(k == pl.num_programs(1) - 1)
    def _():
        # act = Identity; final gating multiply with the residual half.
        res = res_ref[...].astype(jnp.float32)
        out_ref[...] = (acc_ref[...] * res).astype(out_ref.dtype)


# ----------------------------------------------------------------------------
# Wrapper: tiling / VMEM policy
# ----------------------------------------------------------------------------

def _pad(v, m):
    return ((v + m - 1) // m) * m


def _tile_candidates(n, cap):
    """Divisors of n that are multiples of 8, descending, <= cap (fallback: n)."""
    cap = max(1, min(cap, n))
    cands = [t for t in range(cap, 7, -1) if t % 8 == 0 and n % t == 0]
    return cands if cands else [n]


def _vmem_estimate(tm, tk, heads, d, dim_out, itemsize):
    """Bytes of VMEM for one grid step, incl. lane padding and double-buffering."""
    weight = 2 * heads * _pad(tm, 8) * _pad(tk, 128) * 2          # bf16 weight tiles
    gate = 2 * heads * _pad(tk, 8) * _pad(d, 128) * 2             # bf16 gate tiles
    res = 2 * _pad(tm, 8) * _pad(dim_out, 128) * itemsize         # residual tiles
    out = 2 * _pad(tm, 8) * _pad(dim_out, 128) * itemsize         # output tiles
    bias = 2 * heads * _pad(tm, 8) * 128 * 4                      # (heads, tm, 1) padded
    acc = _pad(tm, 8) * _pad(dim_out, 128) * 4                    # f32 accumulator scratch
    return weight + gate + res + out + bias + acc + (2 << 20)     # + temporaries headroom


def _pick_tiles(n, heads, d, dim_out, itemsize, budget):
    # Prefer the largest row tile (amortizes ~0.35us/step overhead, fills the MXU
    # M dim) but cap at n // 2 so grid_m >= 2 and the "parallel" m axis can shard
    # across v7x's two TensorCores; then the largest K tile that fits the budget.
    tm_cands = _tile_candidates(n, min(512, max(8, n // 2)))
    tk_cands = _tile_candidates(n, 2048)
    for tm in tm_cands:
        for tk in tk_cands:
            if _vmem_estimate(tm, tk, heads, d, dim_out, itemsize) <= budget:
                return tm, tk
    return tm_cands[-1], tk_cands[-1]


def _vmem_budget():
    # ~48 MiB on v7x (64 MiB physical), ~96 MiB on v5e/v6e (128 MiB physical).
    try:
        cap = int(pltpu.get_tpu_info().vmem_capacity_bytes)
    except Exception:
        cap = 64 << 20
    return max(32 << 20, (cap * 3) // 4)


def spatial_gating_unit(x, weight, bias, gamma, beta, *, heads=1,
                        block_m=None, block_k=None):
    """x: (n, dim). weight: (heads, n, n). bias: (heads, n). Returns (n, dim // 2)."""
    n, dim = x.shape
    assert dim % 2 == 0
    dim_out = dim // 2
    assert dim_out % heads == 0, "dim // 2 must be divisible by heads"
    assert weight.shape == (heads, n, n), "non-causal SGU requires n == dim_seq"
    assert bias.shape == (heads, n)
    d = dim_out // heads

    # ---- LayerNorm on the gate half, hoisted OUT of the kernel (computed once,
    # two-pass variance to match nn.LayerNorm exactly).  Emitted bf16 and laid
    # out (heads, n, d) so per-head access inside the kernel is a leading-axis
    # index instead of a lane slice.
    gate = x[:, dim_out:].astype(jnp.float32)
    mean = jnp.mean(gate, axis=-1, keepdims=True)
    var = jnp.mean(jnp.square(gate - mean), axis=-1, keepdims=True)
    gate = (gate - mean) * jax.lax.rsqrt(var + 1e-5)
    gate = gate * gamma.reshape(1, dim_out) + beta.reshape(1, dim_out)
    gate_h = gate.astype(jnp.bfloat16).reshape(n, heads, d).transpose(1, 0, 2)

    # Dominant operand: (heads, n, n) spatial weight streamed in bf16 (halves HBM
    # bytes + VMEM footprint, MXU bf16 path).
    w_bf16 = weight.astype(jnp.bfloat16)
    bias_h = bias.reshape(heads, n, 1)

    budget = _vmem_budget()
    auto_tm, auto_tk = _pick_tiles(n, heads, d, dim_out, x.dtype.itemsize, budget)
    tm = block_m if block_m is not None else auto_tm
    tk = block_k if block_k is not None else auto_tk
    assert n % tm == 0 and (tm % 8 == 0 or tm == n)
    assert n % tk == 0 and (tk % 8 == 0 or tk == n)
    grid = (n // tm, n // tk)

    if dim_out % 128 == 0:
        # chunk(2, dim=-1) for the residual half via a column-offset block on x
        # itself (no wrapper-side HBM copy of the res half).
        res_in = x
    else:
        # Unaligned (toy) dim_out: slice in the wrapper so the block's last dim
        # equals the full array dim.
        res_in = x[:, :dim_out]
    res_spec = pl.BlockSpec((tm, dim_out), lambda m, k: (m, 0))

    kernel = functools.partial(sgu_kernel, heads=heads)

    return pl.pallas_call(
        kernel,
        out_shape=jax.ShapeDtypeStruct((n, dim_out), x.dtype),
        grid=grid,
        in_specs=[
            res_spec,                                                # residual rows (per m)
            pl.BlockSpec((heads, tk, d), lambda m, k: (0, k, 0)),    # normalized gate K-tiles
            pl.BlockSpec((heads, tm, tk), lambda m, k: (0, m, k)),   # weight (m, k) tiles
            pl.BlockSpec((heads, tm, 1), lambda m, k: (0, m, 0)),    # bias rows (per m)
        ],
        out_specs=pl.BlockSpec((tm, dim_out), lambda m, k: (m, 0)),
        scratch_shapes=[pltpu.VMEM((tm, dim_out), jnp.float32)],     # f32 accumulator
        compiler_params=pltpu.CompilerParams(
            dimension_semantics=("parallel", "arbitrary"),
            vmem_limit_bytes=int(budget),
        ),
    )(res_in, gate_h, w_bf16, bias_h)


# ----------------------------------------------------------------------------
# Pure-JAX reference + test harness
# ----------------------------------------------------------------------------

def reference_sgu(x, weight, bias, gamma, beta, *, heads=1):
    """Pure-JAX (f32) reference mirroring the PyTorch forward."""
    n, dim = x.shape
    dim_out = dim // 2
    res, gate = x[:, :dim_out], x[:, dim_out:]
    mean = gate.mean(-1, keepdims=True)
    var = ((gate - mean) ** 2).mean(-1, keepdims=True)
    gate = (gate - mean) / jnp.sqrt(var + 1e-5) * gamma + beta
    d = dim_out // heads
    gate = gate.reshape(n, heads, d).transpose(1, 0, 2)          # h n d
    gate = jnp.einsum('hnd,hmn->hmd', gate, weight) + bias[:, :, None]
    gate = gate.transpose(1, 0, 2).reshape(n, dim_out)           # n (h d)
    return gate * res


def _make_inputs(key, *, heads, dim_seq, dim):
    dim_out = dim // 2
    kx, kw = jax.random.split(key)
    x = jax.random.normal(kx, (dim_seq, dim), dtype=jnp.float32)
    init_eps = 0.001 / dim_seq
    weight = jax.random.uniform(kw, (heads, dim_seq, dim_seq), dtype=jnp.float32,
                                minval=-init_eps, maxval=init_eps)
    bias = jnp.ones((heads, dim_seq), dtype=jnp.float32)
    gamma = jnp.ones((dim_out,), dtype=jnp.float32)   # LayerNorm weight
    beta = jnp.zeros((dim_out,), dtype=jnp.float32)   # LayerNorm bias
    return x, weight, bias, gamma, beta


if __name__ == "__main__":
    key = jax.random.PRNGKey(0)
    cases = [
        # (heads, dim_seq, dim, block_m, block_k)
        (1, 256, 256, None, None),   # auto tiles: grid_m >= 2, single K tile
        (1, 256, 256, 64, 128),      # forced K-tiling: exercises accumulator init/finalize
        (2, 256, 256, None, None),   # multi-head (d = 64): leading-axis heads + fused store
        (1, 8, 64, None, None),      # tiny unaligned dim_out: full-extent blocks
    ]

    ok = True
    for i, (heads, dim_seq, dim, bm, bk) in enumerate(cases):
        key, sub = jax.random.split(key)
        x, weight, bias, gamma, beta = _make_inputs(
            sub, heads=heads, dim_seq=dim_seq, dim=dim)
        out = spatial_gating_unit(x, weight, bias, gamma, beta,
                                  heads=heads, block_m=bm, block_k=bk)
        out = jax.block_until_ready(out)
        ref = reference_sgu(x, weight, bias, gamma, beta, heads=heads)
        if out.shape != (dim_seq, dim // 2):
            ok = False
            print(f"case {i}: bad shape {out.shape}")
        elif not jnp.allclose(out, ref, atol=2e-3, rtol=2e-3):
            ok = False
            err = float(jnp.max(jnp.abs(out - ref)))
            print(f"case {i}: mismatch vs reference, max abs err = {err}")

    if ok:
        print("KERNEL_OK")
</pallas_src>

<mosaic_0001>
module attributes {stable_mosaic.version = 11 : i64} {
  func.func @sgu_kernel(%arg0: i32, %arg1: i32, %arg2: memref<128x128xf32, #tpu.memory_space<vmem>>, %arg3: memref<1x256x128xbf16, #tpu.memory_space<vmem>>, %arg4: memref<1x128x256xbf16, #tpu.memory_space<vmem>>, %arg5: memref<1x128x1xf32, #tpu.memory_space<vmem>>, %arg6: memref<128x128xf32, #tpu.memory_space<vmem>>, %arg7: memref<128x128xf32, #tpu.memory_space<vmem>>) attributes {dimension_semantics = [#tpu.dimension_semantics<parallel>, #tpu.dimension_semantics<arbitrary>], iteration_bounds = array<i64: 2, 1>, scalar_prefetch = 0 : i64, scratch_operands = 1 : i64, tpu.core_type = #tpu.core_type<tc>, window_params = [{transform_indices = @transform_0, window_bounds = array<i64: 128, 128>}, {transform_indices = @transform_1, window_bounds = array<i64: 1, 256, 128>}, {transform_indices = @transform_2, window_bounds = array<i64: 1, 128, 256>}, {transform_indices = @transform_3, window_bounds = array<i64: 1, 128, 1>}, {transform_indices = @transform_4, window_bounds = array<i64: 128, 128>}]} {
    %c0_i32 = arith.constant 0 : i32
    %0 = arith.cmpi eq, %arg1, %c0_i32 : i32
    %1 = arith.extui %0 : i1 to i32
    %c0_i32_0 = arith.constant 0 : i32
    %2 = arith.cmpi ne, %1, %c0_i32_0 : i32
    scf.if %2 {
      %c0_12 = arith.constant 0 : index
      %c0_13 = arith.constant 0 : index
      %c0_14 = arith.constant 0 : index
      %14 = vector.load %arg5[%c0_12, %c0_13, %c0_14] : memref<1x128x1xf32, #tpu.memory_space<vmem>>, vector<1x128x1xf32>
      %15 = vector.shape_cast %14 : vector<1x128x1xf32> to vector<128x1xf32>
      %16 = vector.shape_cast %15 : vector<128x1xf32> to vector<128x1xf32>
      %17 = vector.broadcast %16 : vector<128x1xf32> to vector<128x128xf32>
      %c0_15 = arith.constant 0 : index
      %c0_16 = arith.constant 0 : index
      %18 = vector.load %arg7[%c0_15, %c0_16] : memref<128x128xf32, #tpu.memory_space<vmem>>, vector<128x128xf32>
      tpu.vector_store %arg7[%c0_15, %c0_16], %17 {strides = array<i32>} : memref<128x128xf32, #tpu.memory_space<vmem>>, vector<128x128xf32>,
    } else {
    }
    %c0 = arith.constant 0 : index
    %c0_1 = arith.constant 0 : index
    %3 = vector.load %arg7[%c0, %c0_1] : memref<128x128xf32, #tpu.memory_space<vmem>>, vector<128x128xf32>
    %c0_2 = arith.constant 0 : index
    %c0_3 = arith.constant 0 : index
    %c0_4 = arith.constant 0 : index
    %4 = vector.load %arg4[%c0_2, %c0_3, %c0_4] : memref<1x128x256xbf16, #tpu.memory_space<vmem>>, vector<1x128x256xbf16>
    %5 = vector.shape_cast %4 : vector<1x128x256xbf16> to vector<128x256xbf16>
    %c0_5 = arith.constant 0 : index
    %c0_6 = arith.constant 0 : index
    %c0_7 = arith.constant 0 : index
    %6 = vector.load %arg3[%c0_5, %c0_6, %c0_7] : memref<1x256x128xbf16, #tpu.memory_space<vmem>>, vector<1x256x128xbf16>
    %7 = vector.shape_cast %6 : vector<1x256x128xbf16> to vector<256x128xbf16>
    %cst = arith.constant dense<0.000000e+00> : vector<128x128xf32>
    %8 = tpu.matmul %5, %7, %cst {dimension_numbers = #tpu.dot_dimension_numbers<[1], [0], [0], [1], [0, 0, 1, 1], [], []>} : vector<128x256xbf16>, vector<256x128xbf16>, vector<128x128xf32> -> vector<128x128xf32>
    %9 = arith.addf %3, %8 : vector<128x128xf32>
    %c0_8 = arith.constant 0 : index
    %c0_9 = arith.constant 0 : index
    %10 = vector.load %arg7[%c0_8, %c0_9] : memref<128x128xf32, #tpu.memory_space<vmem>>, vector<128x128xf32>
    tpu.vector_store %arg7[%c0_8, %c0_9], %9 {strides = array<i32>} : memref<128x128xf32, #tpu.memory_space<vmem>>, vector<128x128xf32>,
    %c0_i32_10 = arith.constant 0 : i32
    %11 = arith.cmpi eq, %arg1, %c0_i32_10 : i32
    %12 = arith.extui %11 : i1 to i32
    %c0_i32_11 = arith.constant 0 : i32
    %13 = arith.cmpi ne, %12, %c0_i32_11 : i32
    scf.if %13 {
      %c0_12 = arith.constant 0 : index
      %c0_13 = arith.constant 0 : index
      %14 = vector.load %arg2[%c0_12, %c0_13] : memref<128x128xf32, #tpu.memory_space<vmem>>, vector<128x128xf32>
      %c0_14 = arith.constant 0 : index
      %c0_15 = arith.constant 0 : index
      %15 = vector.load %arg7[%c0_14, %c0_15] : memref<128x128xf32, #tpu.memory_space<vmem>>, vector<128x128xf32>
      %16 = arith.mulf %15, %14 : vector<128x128xf32>
      %c0_16 = arith.constant 0 : index
      %c0_17 = arith.constant 0 : index
      %17 = vector.load %arg6[%c0_16, %c0_17] : memref<128x128xf32, #tpu.memory_space<vmem>>, vector<128x128xf32>
      tpu.vector_store %arg6[%c0_16, %c0_17], %16 {strides = array<i32>} : memref<128x128xf32, #tpu.memory_space<vmem>>, vector<128x128xf32>,
    } else {
    }
    return
  }
  func.func @transform_0(%arg0: i32, %arg1: i32) -> (i32, i32) {
    %c0_i32 = arith.constant 0 : i32
    %c0_i32_0 = arith.constant 0 : i32
    return %arg0, %c0_i32 : i32, i32
  }
  func.func @transform_1(%arg0: i32, %arg1: i32) -> (i32, i32, i32) {
    %c0_i32 = arith.constant 0 : i32
    %c0_i32_0 = arith.constant 0 : i32
    %c0_i32_1 = arith.constant 0 : i32
    return %c0_i32, %arg1, %c0_i32_0 : i32, i32, i32
  }
  func.func @transform_2(%arg0: i32, %arg1: i32) -> (i32, i32, i32) {
    %c0_i32 = arith.constant 0 : i32
    %c0_i32_0 = arith.constant 0 : i32
    return %c0_i32, %arg0, %arg1 : i32, i32, i32
  }
  func.func @transform_3(%arg0: i32, %arg1: i32) -> (i32, i32, i32) {
    %c0_i32 = arith.constant 0 : i32
    %c0_i32_0 = arith.constant 0 : i32
    %c0_i32_1 = arith.constant 0 : i32
    return %c0_i32, %arg0, %c0_i32_0 : i32, i32, i32
  }
  func.func @transform_4(%arg0: i32, %arg1: i32) -> (i32, i32) {
    %c0_i32 = arith.constant 0 : i32
    %c0_i32_0 = arith.constant 0 : i32
    return %arg0, %c0_i32 : i32, i32
  }
}

</mosaic_0001>

<bundles_post_ra>
// kernel: tpu_custom_call.1
= control target key start
LH: loop header
LB: loop body
LE: loop exit
PB: predicated region body
PF: predicated region fallthrough
CT: control target
= control target key end

     0   :  { %9 = vsyncpa [#allocation4], 0  ;;  %s1720_s0 = inlined_call_operand.hbm [shape: f32[256,256], index: 0, kind: input, shape index: {}]   ;;  %s1721_s1 = inlined_call_operand.hbm [shape: bf16[1,256,128], index: 1, kind: input, shape index: {}]   ;;  %s1722_s2 = inlined_call_operand.vmem [shape: bf16[1,256,256], index: 2, kind: input, shape index: {}]   ;;  %s1723_s3 = inlined_call_operand.vmem [shape: f32[1,256,1], index: 3, kind: input, shape index: {}]   ;;  %s1724_s4 = inlined_call_operand.hbm [shape: f32[256,128], index: 4, kind: output, shape index: {}]  }
   0x1   :  { %11 = vsyncpa [#allocation4 + $0x1], 0 }
   0x2   :  { %12 = vsyncpa [#allocation7], 0 }
   0x3   :  { %13 = vsyncpa [#allocation5], 0 }
   0x4   :  { %15 = vsyncpa [#allocation5 + $0x1], 0  ;;  %s1446_s15 = smov 0   ;;  %s1448_s16 = smov 0  }
   0x5   :  { %s1450_s17 = smov 0   ;;  %s1452_s18 = smov 0  }
   0x6   :  { %s1454_s19 = smov 0   ;;  %s1456_s20 = smov 0  }
   0x7 LB: > { %1731 = sst [smem:[#allocation12_spill]] %s1388_s15  ;;  %s1008_s21 = sadd.s32 4294967295, %s1408_s20   ;;  %s1408_s20 = sphi %s1456_s20, %s21_s20   ;;  %s1404_s19 = sphi %s1454_s19, %s1754_s19   ;;  %s1400_s18 = sphi %s1452_s18, %s1753_s18   ;;  %s1396_s17 = sphi %s1450_s17, %s1752_s17   ;;  %s1392_s16 = sphi %s1448_s16, %s1751_s16   ;;  %s1388_s15 = sphi %s1446_s15, %s1750_s15  }
   0x8   : > { %1732 = sst [smem:[#allocation13_spill]] %s1408_s20  ;;  %s1009_s22 = sadd.s32 4294967294, %s1408_s20  }
   0x9   : > { %p47_p0 = scmp.ne.s32.totalorder %s1396_s17, %s1392_s16  ;;  %p48_p1 = scmp.eq.s32.totalorder %s1408_s20, 0 }
   0xa   : > { %p53_p2 = scmp.ne.s32.totalorder %s1392_s16, %s1388_s15  ;;  %p1483_p3 = scmp.eq.s32.totalorder %s1008_s21, 0 }
   0xb   : > { %p1487_p4 = por %p48_p1, %p47_p0  ;;  %p157_p5 = scmp.eq.s32.totalorder %s1008_s21, 1 }
   0xc   : > { %p1493_p6 = por %p1483_p3, %p53_p2  ;;  %p163_p7 = scmp.eq.s32.totalorder %s1009_s22, 1 }
   0xd   : > { %p1497_p8 = por %p157_p5, %p47_p0  ;;  %p1010_p9 = scmp.ge.s32.totalorder %s1408_s20, 1 }
   0xe   : > { %s1735_s25 = scalar_select %p1493_p6, 1, 0 }
   0xf   : > { %s1736_s26 = scalar_select %p1497_p8, 1, 0 }
  0x10   : > { %p1502_p10 = por %p163_p7, %p53_p2  ;;  %p170_p11 = scmp.lt.s32.totalorder %s1408_s20, 3 }
  0x11   : > { %s1410_s29 = smov [#allocation6]   ;;  %p1168_p1 = scmp.lt.s32.totalorder %s1408_s20, 2 }
  0x12   : > { %s1737_s27 = scalar_select %p1502_p10, 1, 0 }
  0x13   : > { %p1507_p12 = pnand %p1010_p9, %p170_p11  ;;  %s185_s30 = sshll.u32 %s1410_s29, 4  ;;  %s186_s30 = int_to_ptr.vmem [resolvable:$true] %s185_s30 }
  0x14   : > { %1738 = sst [smem:[#allocation14_spill]] %s1737_s27  ;;  %p1523_p2 = pnand %p1168_p1, %p1487_p4 }
  0x15   : > { %p1155_p13 = pneg %p1507_p12  ;;  %s33_s7 = sadd.s32 1, %s1404_s19 }
  0x16   : > { %s1281_s8 = scalar_lea.vmem %s186_s30, 2048  ;;  %p1289_p0 = scmp.lt.s32.totalorder %s186_s30, %s186_s30 }
  0x17   : > { %p1517_p5 = pnand %p1155_p13, %p1483_p3  ;;  %p1282_p9 = scmp.ne.s32.totalorder %s186_s30, %s1281_s8 }
  0x18   : > { %p1290_p8 = scmp.lt.s32.totalorder %s1281_s8, %s1281_s8 }
  0x19   : > { %p1272_p7 = pneg %p1517_p5 }
  0x1a   : > { %p1291_p6 = por %p1290_p8, %p1289_p0 }
  0x1b   : > { %p1284_p11 = pnand %p1282_p9, %p1272_p7 }
  0x1d   : > { %p1285_p10 = pneg %p1284_p11 }
  0x1f   : > { %p1292_p13 = pnand %p1291_p6, %p1285_p10 }
  0x21   : > { %1295 = shalt.err (!%p1292_p13)
}
  0x22   : > { %s1411_s9 = smov 64   ;;  %s1412_s10 = smov 4  }
  0x23   : > { %1158 = dma.hbm_to_vmem [thread:$0]  (!%p1517_p5), %s1721_s1, 2048, %s186_s30, [#allocation7], %s1411_s9, %s1411_s9, %s1412_s10  }
  0x24   : > { %p35_p4 = scmp.ge.s32.totalorder %s33_s7, 2  ;;  %s40_s13 = sadd.s32 1, %s1396_s17 }
  0x25   : > { %s199_s14 = sand.u32 1, %s1396_s17   ;;  %s1064_s24 = sshll.u32 %s1404_s19, 12 }
  0x26   : > { %s1756_s7 = smov (%p35_p4, %s33_s7), 0  ;;  %s1013_s21 = sshll.u32 %s199_s14, 7 }
  0x27   : > { %s37_s22 = ssub.s32 %s1404_s19, %s1756_s7  ;;  %s210_s20 = scalar_lea.hbm %s1720_s0, %s1064_s24 }
  0x28   : > { %p38_p6 = scmp.eq.s32.totalorder %s37_s22, 0  ;;  %s203_s5 = scalar_lea.vmem [#allocation3], %s1013_s21 }
  0x29   : > { %s211_s27 = sshll.u32 %s203_s5, 4  ;;  %s200_s30 = scalar_lea.sflag [#allocation4], %s199_s14  ;;  %s212_s27 = int_to_ptr.vmem [resolvable:$true] %s211_s27 }
  0x2a   : > { %s1546_s15 = scalar_select %p38_p6, %s1396_s17, %s40_s13  }
  0x2b   : > { %p1298_p8 = pneg %p1523_p2  ;;  %s1309_s9 = scalar_lea.vmem %s212_s27, 2048 }
  0x2c   : > { %p1310_p10 = scmp.ne.s32.totalorder %s212_s27, %s1309_s9  ;;  %s1413_s10 = smov [#allocation3]  }
  0x2d   : > { %s1314_s11 = sshll.u32 %s1413_s10, 4  ;;  %s1315_s11 = int_to_ptr.vmem [resolvable:$false] %s1314_s11 }
  0x2e   : > { %p1312_p0 = pnand %p1310_p10, %p1298_p8  ;;  %s1316_s12 = scalar_lea.vmem %s1315_s11, 4096 }
  0x2f   : > { %p1317_p5 = scmp.lt.s32.totalorder %s212_s27, %s1315_s11  ;;  %p1318_p7 = scmp.lt.s32.totalorder %s1316_s12, %s1309_s9 }
  0x30   : > { %p1313_p1 = pneg %p1312_p0 }
  0x31   : > { %p1319_p9 = por %p1318_p7, %p1317_p5 }
  0x33   : > { %p1320_p11 = pnand %p1319_p9, %p1313_p1 }
  0x35   : > { %1323 = shalt.err (!%p1320_p11)
}
  0x36   : > { %s1414_s21 = smov 256   ;;  %s1415_s13 = smov 128  }
  0x37   : > { %s1416_s22 = smov 8   ;;  %247 = sbr.rel (%p1507_p12) target bundleno = 340 (0x154), region = 36 }
  0x38   : > { %1162 = dma.hbm_to_vmem [thread:$0]  (!%p1523_p2), %s210_s20, 2048, %s212_s27, %s200_s30, %s1414_s21, %s1415_s13, %s1416_s22  }
  0x39   : > { %s1555_s14 = sand.u32 (!%p1507_p12), 1, %s1392_s16   ;;  %p1742_p13 = scmp.ne.s32.totalorder (!%p1507_p12), %s1735_s25, 0 }
  0x3a   : > { %s1018_s24 = sshll.u32 (!%p1507_p12), %s1555_s14, 7  ;;  %s250_s29 = scalar_lea.sflag (!%p1507_p12), [#allocation4], %s1555_s14 }
  0x3b   : > { %s1561_s8 = scalar_lea.vmem (!%p1507_p12), [#allocation3], %s1018_s24 }
  0x3c   : > { %1375 = dma.done.wait (%p1742_p13), %s250_s29, 2048  }
  0x3d   : > { %1377 = vsyncadd (%p1742_p13), %s250_s29, 4294965248 }
  0x3e   : > { %1379 = dma.done.wait (%p1483_p3), [#allocation7], 2048  }
  0x3f   : > { %1381 = vsyncadd (%p1483_p3), [#allocation7], 4294965248  ;;  %v1417_v0 = vmov 0   ;;  %v1230_v1 = vld [vmem:[#allocation6 + $0x78] sm:$0xff]   ;;  %s1021_s20 = sshll.u32 %s1400_s18, 4  ;;  %v1232_v3 = vld [vmem:[#allocation6 + $0x70] sm:$0xff]  }
  0x40   : > { %1229 = vset.pattern.permute.xlu1 %v1417_v0  ;;  %1228 = vset.pattern.permute.xlu0 %v1417_v0  ;;  %v1231_v2 = vld [vmem:[#allocation6 + $0x38] sm:$0xff]   ;;  %v1233_v4 = vld [vmem:[#allocation6 + $0x30] sm:$0xff]   ;;  %p301_p12 = scmp.lt.s32.totalorder %s1021_s20, 31  ;;  %v1234_v5 = vld [vmem:[#allocation6 + $0x68] sm:$0xff]   ;;  %s1631_s9 = scalar_lea.vmem [#allocation8], %s1018_s24 }
  0x41   : > { %1067 = vmatprep.subr.bf16.mxu0 %v1230_v1  ;;  %1131 = vmatprep.subr.bf16.mxu1 %v1230_v1  ;;  %v1235_v6 = vld [vmem:[#allocation6 + $0x28] sm:$0xff]   ;;  %v1236_v7 = vld [vmem:[#allocation6 + $0x60] sm:$0xff]   ;;  %v1238_v9 = vld [vmem:[#allocation6 + $0x58] sm:$0xff]   ;;  %s1066_s10 = sshll.u32 %s1400_s18, 11  ;;  %s885_s11 = sshll.u32 %s1631_s9, 4  ;;  %s1670_s11 = int_to_ptr.vmem [resolvable:$true] %s885_s11 }
  0x42   : > { %1068 = vmatpush3.bf16.msra.mxu0 %v1231_v2  ;;  %1139 = vmatpush3.bf16.msra.mxu1 %v1231_v2  ;;  %s1758_s20 = smov (!%p301_p12, %s1021_s20), 31  ;;  %v1237_v8 = vld [vmem:[#allocation6 + $0x20] sm:$0xff]   ;;  %v1239_v10 = vld [vmem:[#allocation6 + $0x18] sm:$0xff]   ;;  %v1240_v11 = vld [vmem:[#allocation6 + $0x50] sm:$0xff]   ;;  %s1668_s13 = scalar_lea.hbm %s1724_s4, %s1066_s10 }
  0x43   : > { %1069 = vmatprep.subr.bf16.mxu0 %v1232_v3  ;;  %1132 = vmatprep.subr.bf16.mxu1 %v1232_v3  ;;  %s1065_s23 = sshll.u32 %s1758_s20, 3  ;;  %v1241_v14 = vld [vmem:[#allocation6 + $0x10] sm:$0xff]   ;;  %v1242_v15 = vld [vmem:[#allocation6 + $0x48] sm:$0xff]   ;;  %v1244_v17 = vld [vmem:[#allocation6 + $0x40] sm:$0xff]   ;;  %s872_s18 = scalar_lea.sflag [#allocation5], %s1555_s14 }
  0x44   : > { %s1578_s28 = scalar_lea.vmem %s1722_s2, %s1065_s23  ;;  %v1243_v16 = vld [vmem:[#allocation6 + $0x8] sm:$0xff]   ;;  %s1585_s30 = scalar_lea.vmem %s1723_s3, %s1065_s23  ;;  %v1245_v19 = vld [vmem:[#allocation6] sm:$0xff]  }
  0x45   : > { %v1248_v12 = vld [vmem:[%s1578_s28 + $0x4] ss:$8 sps:$4 sm:$0xff]   ;;  %v325_v18 = vld [vmem:[%s1585_s30 + $0x10] sm:$0xff]  ;;  %v1246_v21 = vld [vmem:[%s1578_s28] ss:$8 sps:$4 sm:$0xff]   ;;  %s1324_s22 = scalar_lea.vmem %s1670_s11, 2048 }
  0x46   : > { %1070 = vmatpush3.bf16.msra.mxu0 %v1233_v4  ;;  %1140 = vmatpush3.bf16.msra.mxu1 %v1233_v4  ;;  %v1251_v13 = vld [vmem:[%s1578_s28 + $0x44] ss:$8 sps:$4 sm:$0xff]   ;;  %v1249_v22 = vld [vmem:[%s1578_s28 + $0x40] ss:$8 sps:$4 sm:$0xff]   ;;  %v326_v23 = vld [vmem:[%s1585_s30 + $0x18] sm:$0xff]  ;;  %p1325_p3 = scmp.ne.s32.totalorder %s1670_s11, %s1324_s22  ;;  %p1743_p2 = scmp.ne.s32.totalorder %s1736_s26, 0 }
  0x47   : > { %1071 = vmatprep.subr.bf16.mxu0 %v1234_v5  ;;  %1133 = vmatprep.subr.bf16.mxu1 %v1234_v5  ;;  %v323_v20 = vld [vmem:[%s1585_s30] sm:$0xff]  ;;  %v324_v24 = vld [vmem:[%s1585_s30 + $0x8] sm:$0xff]  ;;  %v1252_v25 = vld [vmem:[%s1578_s28 + $0x14] ss:$8 sps:$4 sm:$0xff]   ;;  %s1418_s24 = smov [#allocation8]  }
  0x48   : > { %707 = vmatprep.mubr.bf16.mxu0 %v1248_v12  ;;  %739 = vmatprep.mubr.bf16.mxu1 %v1251_v13  ;;  %v1254_v26 = vld [vmem:[%s1578_s28 + $0x54] ss:$8 sps:$4 sm:$0xff]   ;;  %v328_v27 = vld [vmem:[%s1585_s30 + $0x28] sm:$0xff]  ;;  %v327_v28 = vld [vmem:[%s1585_s30 + $0x20] sm:$0xff]  ;;  %p1326_p4 = pnand %p1325_p3, %p1743_p2  ;;  %s1328_s29 = sshll.u32 %s1418_s24, 4  ;;  %s1329_s29 = int_to_ptr.vmem [resolvable:$false] %s1328_s29 }
  0x49   : > { %351 = vperm.xlu1 %1229, %v325_v18   ;;  %341 = vperm.xlu0 %1228, %v323_v20   ;;  %v1256_v29 = vld [vmem:[%s1578_s28 + $0x10] ss:$8 sps:$4 sm:$0xff]   ;;  %v1258_v33 = vld [vmem:[%s1578_s28 + $0x24] ss:$8 sps:$4 sm:$0xff]   ;;  %v1262_v37 = vld [vmem:[%s1578_s28 + $0x20] ss:$8 sps:$4 sm:$0xff]   ;;  %p1331_p8 = scmp.lt.s32.totalorder %s1670_s11, %s1329_s29 }
  0x4a   : > { %1072 = vmatpush3.bf16.msra.mxu0 %v1235_v6  ;;  %1141 = vmatpush3.bf16.msra.mxu1 %v1235_v6  ;;  %v1257_v30 = vld [vmem:[%s1578_s28 + $0x50] ss:$8 sps:$4 sm:$0xff]   ;;  %v1260_v34 = vld [vmem:[%s1578_s28 + $0x64] ss:$8 sps:$4 sm:$0xff]   ;;  %v1263_v38 = vld [vmem:[%s1578_s28 + $0x60] ss:$8 sps:$4 sm:$0xff]   ;;  %p1327_p6 = pneg %p1326_p4 }
  0x4b   : > { %1073 = vmatprep.subr.bf16.mxu0 %v1236_v7  ;;  %1134 = vmatprep.subr.bf16.mxu1 %v1236_v7  ;;  %v330_v31 = vld [vmem:[%s1585_s30 + $0x38] sm:$0xff]  ;;  %v329_v32 = vld [vmem:[%s1585_s30 + $0x30] sm:$0xff]  ;;  %v332_v35 = vld [vmem:[%s1585_s30 + $0x48] sm:$0xff] }
  0x4c   : > { %v331_v36 = vld [vmem:[%s1585_s30 + $0x40] sm:$0xff]  ;;  %v334_v39 = vld [vmem:[%s1585_s30 + $0x58] sm:$0xff]  ;;  %v333_v40 = vld [vmem:[%s1585_s30 + $0x50] sm:$0xff] }
  0x4d   : > { %356 = vperm.xlu1 %1229, %v326_v23   ;;  %346 = vperm.xlu0 %1228, %v324_v24   ;;  %v1264_v41 = vld [vmem:[%s1578_s28 + $0x34] ss:$8 sps:$4 sm:$0xff]   ;;  %v336_v43 = vld [vmem:[%s1585_s30 + $0x68] sm:$0xff]  ;;  %v335_v44 = vld [vmem:[%s1585_s30 + $0x60] sm:$0xff] }
  0x4e   : > { %1074 = vmatpush3.bf16.msra.mxu0 %v1237_v8  ;;  %1142 = vmatpush3.bf16.msra.mxu1 %v1237_v8  ;;  %v1266_v42 = vld [vmem:[%s1578_s28 + $0x74] ss:$8 sps:$4 sm:$0xff]   ;;  %v1268_v45 = vld [vmem:[%s1578_s28 + $0x30] ss:$8 sps:$4 sm:$0xff]   ;;  %v807_v0 = vld [vmem:[%s1561_s8] sm:$0xff] }
  0x4f   : > { %1075 = vmatprep.subr.bf16.mxu0 %v1238_v9  ;;  %1135 = vmatprep.subr.bf16.mxu1 %v1238_v9  ;;  %v1269_v46 = vld [vmem:[%s1578_s28 + $0x70] ss:$8 sps:$4 sm:$0xff]   ;;  %v815_v1 = vld [vmem:[%s1561_s8 + $0x40] sm:$0xff]  ;;  %v808_v13 = vld [vmem:[%s1561_s8 + $0x8] sm:$0xff] }
  0x50   : > { %v338_v47 = vld [vmem:[%s1585_s30 + $0x78] sm:$0xff]  ;;  %v337_v48 = vld [vmem:[%s1585_s30 + $0x70] sm:$0xff] }
  0x51   : > { %366 = vperm.xlu1 %1229, %v328_v27   ;;  %361 = vperm.xlu0 %1228, %v327_v28   ;;  %v817_v27 = vld [vmem:[%s1561_s8 + $0x50] sm:$0xff] }
  0x52   : > { %1076 = vmatpush3.bf16.msra.mxu0 %v1239_v10  ;;  %1143 = vmatpush3.bf16.msra.mxu1 %v1239_v10 }
  0x53   : > { %1077 = vmatprep.subr.bf16.mxu0 %v1240_v11  ;;  %1136 = vmatprep.subr.bf16.mxu1 %v1240_v11 }
  0x55   : > { %376 = vperm.xlu1 %1229, %v330_v31   ;;  %371 = vperm.xlu0 %1228, %v329_v32  }
  0x56   : > { %1078 = vmatpush3.bf16.msra.mxu0 %v1241_v14  ;;  %1144 = vmatpush3.bf16.msra.mxu1 %v1241_v14  ;;  %v816_v14 = vld [vmem:[%s1561_s8 + $0x48] sm:$0xff] }
  0x57   : > { %1079 = vmatprep.subr.bf16.mxu0 %v1242_v15  ;;  %1137 = vmatprep.subr.bf16.mxu1 %v1242_v15 }
  0x59   : > { %386 = vperm.xlu1 %1229, %v332_v35   ;;  %381 = vperm.xlu0 %1228, %v331_v36  }
  0x5a   : > { %1080 = vmatpush3.bf16.msra.mxu0 %v1243_v16  ;;  %1145 = vmatpush3.bf16.msra.mxu1 %v1243_v16 }
  0x5b   : > { %1081 = vmatprep.subr.bf16.mxu0 %v1244_v17  ;;  %1138 = vmatprep.subr.bf16.mxu1 %v1244_v17 }
  0x5d   : > { %396 = vperm.xlu1 %1229, %v334_v39   ;;  %391 = vperm.xlu0 %1228, %v333_v40   ;;  %v810_v39 = vld [vmem:[%s1561_s8 + $0x18] sm:$0xff] }
  0x5e   : > { %1082 = vmatpush3.bf16.msra.mxu0 %v1245_v19  ;;  %1146 = vmatpush3.bf16.msra.mxu1 %v1245_v19  ;;  %v818_v40 = vld [vmem:[%s1561_s8 + $0x58] sm:$0xff] }
  0x61   : > { %708 = vmatmul.mubr.bf16.vlgmr.msra.gmra.mxu0 %v1246_v21  ;;  %740 = vmatmul.mubr.bf16.vlgmr.msra.gmra.mxu1 %v1249_v22 }
  0x62   : > { %715 = vmatprep.mubr.bf16.mxu0 %v1252_v25  ;;  %747 = vmatprep.mubr.bf16.mxu1 %v1254_v26  ;;  %v809_v26 = vld [vmem:[%s1561_s8 + $0x10] sm:$0xff] }
  0x63   : > { %406 = vperm.xlu1 %1229, %v336_v43   ;;  %401 = vperm.xlu0 %1228, %v335_v44  }
  0x67   : > { %416 = vperm.xlu1 %1229, %v338_v47   ;;  %411 = vperm.xlu0 %1228, %v337_v48  }
  0x69   : > { %716 = vmatmul.mubr.bf16.gmra.mxu0 %v1256_v29  ;;  %748 = vmatmul.mubr.bf16.gmra.mxu1 %v1257_v30 }
  0x6a   : > { %723 = vmatprep.mubr.bf16.mxu0 %v1258_v33  ;;  %755 = vmatprep.mubr.bf16.mxu1 %v1260_v34 }
  0x71   : > { %724 = vmatmul.mubr.bf16.gmra.mxu0 %v1262_v37  ;;  %756 = vmatmul.mubr.bf16.gmra.mxu1 %v1263_v38 }
  0x72   : > { %731 = vmatprep.mubr.bf16.mxu0 %v1264_v41  ;;  %763 = vmatprep.mubr.bf16.mxu1 %v1266_v42 }
  0x79   : > { %732 = vmatmul.mubr.bf16.gmra.mxu0 %v1268_v45  ;;  %764 = vmatmul.mubr.bf16.gmra.mxu1 %v1269_v46 }
  0xc4   : > { %v342_v49 = vpop.permute.xlu0 %341  ;;  %v352_v50 = vpop.permute.xlu1 %351 }
  0xc8   : > { %v347_v51 = vpop.permute.xlu0 %346  ;;  %v357_v52 = vpop.permute.xlu1 %356 }
  0xcc   : > { %v1617_v53 = vpop.permute.xlu0 %361  ;;  %v1619_v54 = vpop.permute.xlu1 %366 }
  0xd0   : > { %v1621_v55 = vpop.permute.xlu0 %371  ;;  %v1623_v58 = vpop.permute.xlu1 %376 }
  0xd4   : > { %v382_v61 = vpop.permute.xlu0 %381  ;;  %v387_v8 = vpop.permute.xlu1 %386 }
  0xd8   : > { %v392_v21 = vpop.permute.xlu0 %391  ;;  %v397_v34 = vpop.permute.xlu1 %396 }
  0xde   : > { %v402_v47 = vpop.permute.xlu0 %401 }
 0x121   : > { %v1083_v56 = vpop.f32.mrf.mxu0  ;;  %v1107_v57 = vpop.f32.mrf.mxu1 }
 0x123   : > { %v1084_v59 = vpop.f32.mrf.mxu0  ;;  %v1108_v60 = vpop.f32.mrf.mxu1 }
 0x124   : > { %v1085_v62 = vadd.f32 %v1084_v59, %v1083_v56  ;;  %v1109_v63 = vadd.f32 %v1108_v60, %v1107_v57  ;;  %v811_v56 = vld [vmem:[%s1561_s8 + $0x20] sm:$0xff] }
 0x125   : > { %v1086_v2 = vpop.f32.mrf.mxu0  ;;  %v1110_v3 = vpop.f32.mrf.mxu1  ;;  %v819_v57 = vld [vmem:[%s1561_s8 + $0x60] sm:$0xff] }
 0x126   : > { %v772_v4 = vadd.f32 %v1085_v62, %v342_v49  ;;  %v780_v5 = vadd.f32 %v1109_v63, %v382_v61 }
 0x127   : > { %v1087_v6 = vpop.f32.mrf.mxu0  ;;  %v1111_v7 = vpop.f32.mrf.mxu1 }
 0x128   : > { %v839_v9 = vmul.f32 %v807_v0, %v772_v4  ;;  %v847_v10 = vmul.f32 %v815_v1, %v780_v5  ;;  %v1088_v11 = vadd.f32 %v1087_v6, %v1086_v2  ;;  %v1112_v12 = vadd.f32 %v1111_v7, %v1110_v3  ;;  %v407_v0 = vpop.permute.xlu1 %406  ;;  %v812_v5 = vld [vmem:[%s1561_s8 + $0x28] sm:$0xff] }
 0x129   : > { %v1089_v15 = vpop.f32.mrf.mxu0  ;;  %v1113_v16 = vpop.f32.mrf.mxu1  ;;  %v820_v6 = vld [vmem:[%s1561_s8 + $0x68] sm:$0xff] }
 0x12a   : > { %855 = vst [vmem:[%s1631_s9] sm:$0xff] %v839_v9  ;;  %863 = vst [vmem:[%s1631_s9 + $0x40] sm:$0xff] %v847_v10  ;;  %v773_v17 = vadd.f32 %v1088_v11, %v347_v51  ;;  %v781_v18 = vadd.f32 %v1112_v12, %v387_v8  ;;  %v412_v12 = vpop.permute.xlu0 %411 }
 0x12b   : > { %v1090_v19 = vpop.f32.mrf.mxu0  ;;  %v1114_v20 = vpop.f32.mrf.mxu1 }
 0x12c   : > { %v840_v22 = vmul.f32 %v808_v13, %v773_v17  ;;  %v848_v23 = vmul.f32 %v816_v14, %v781_v18  ;;  %v1091_v24 = vadd.f32 %v1090_v19, %v1089_v15  ;;  %v1115_v25 = vadd.f32 %v1114_v20, %v1113_v16  ;;  %v813_v17 = vld [vmem:[%s1561_s8 + $0x30] sm:$0xff] }
 0x12d   : > { %v1092_v28 = vpop.f32.mrf.mxu0  ;;  %v1116_v29 = vpop.f32.mrf.mxu1  ;;  %v821_v18 = vld [vmem:[%s1561_s8 + $0x70] sm:$0xff] }
 0x12e   : > { %856 = vst [vmem:[%s1631_s9 + $0x8] sm:$0xff] %v840_v22  ;;  %864 = vst [vmem:[%s1631_s9 + $0x48] sm:$0xff] %v848_v23  ;;  %v774_v30 = vadd.f32 %v1091_v24, %v352_v50  ;;  %v782_v31 = vadd.f32 %v1115_v25, %v392_v21 }
 0x12f   : > { %v1093_v32 = vpop.f32.mrf.mxu0  ;;  %v1117_v33 = vpop.f32.mrf.mxu1 }
 0x130   : > { %v841_v35 = vmul.f32 %v809_v26, %v774_v30  ;;  %v849_v36 = vmul.f32 %v817_v27, %v782_v31  ;;  %v1094_v37 = vadd.f32 %v1093_v32, %v1092_v28  ;;  %v1118_v38 = vadd.f32 %v1117_v33, %v1116_v29  ;;  %v417_v28 = vpop.permute.xlu1 %416  ;;  %v814_v29 = vld [vmem:[%s1561_s8 + $0x38] sm:$0xff] }
 0x131   : > { %v1095_v41 = vpop.f32.mrf.mxu0  ;;  %v1119_v42 = vpop.f32.mrf.mxu1  ;;  %v822_v30 = vld [vmem:[%s1561_s8 + $0x78] sm:$0xff]  ;;  %s1330_s8 = scalar_lea.vmem %s1329_s29, 4096 }
 0x132   : > { %857 = vst [vmem:[%s1631_s9 + $0x10] sm:$0xff] %v841_v35  ;;  %865 = vst [vmem:[%s1631_s9 + $0x50] sm:$0xff] %v849_v36  ;;  %v775_v43 = vadd.f32 %v1094_v37, %v357_v52  ;;  %v783_v44 = vadd.f32 %v1118_v38, %v397_v34  ;;  %p1332_p10 = scmp.lt.s32.totalorder %s1330_s8, %s1324_s22 }
 0x133   : > { %v1096_v45 = vpop.f32.mrf.mxu0  ;;  %v1120_v46 = vpop.f32.mrf.mxu1 }
 0x134   : > { %v842_v48 = vmul.f32 %v810_v39, %v775_v43  ;;  %v850_v49 = vmul.f32 %v818_v40, %v783_v44  ;;  %v1097_v50 = vadd.f32 %v1096_v45, %v1095_v41  ;;  %v1121_v51 = vadd.f32 %v1120_v46, %v1119_v42  ;;  %p1333_p0 = por %p1332_p10, %p1331_p8 }
 0x135   : > { %v1098_v59 = vpop.f32.mrf.mxu0  ;;  %v1122_v60 = vpop.f32.mrf.mxu1 }
 0x136   : > { %858 = vst [vmem:[%s1631_s9 + $0x18] sm:$0xff] %v842_v48  ;;  %866 = vst [vmem:[%s1631_s9 + $0x58] sm:$0xff] %v850_v49  ;;  %v776_v52 = vadd.f32 %v1097_v50, %v1617_v53  ;;  %v784_v61 = vadd.f32 %v1121_v51, %v402_v47  ;;  %p1334_p1 = pnand %p1333_p0, %p1327_p6 }
 0x137   : > { %v1099_v62 = vpop.f32.mrf.mxu0  ;;  %v1123_v63 = vpop.f32.mrf.mxu1 }
 0x138   : > { %v843_v1 = vmul.f32 %v811_v56, %v776_v52  ;;  %v851_v2 = vmul.f32 %v819_v57, %v784_v61  ;;  %v1100_v3 = vadd.f32 %v1099_v62, %v1098_v59  ;;  %v1124_v4 = vadd.f32 %v1123_v63, %v1122_v60 }
 0x139   : > { %v1101_v7 = vpop.f32.mrf.mxu0  ;;  %v1125_v8 = vpop.f32.mrf.mxu1 }
 0x13a   : > { %859 = vst [vmem:[%s1631_s9 + $0x20] sm:$0xff] %v843_v1  ;;  %867 = vst [vmem:[%s1631_s9 + $0x60] sm:$0xff] %v851_v2  ;;  %v777_v53 = vadd.f32 %v1100_v3, %v1619_v54  ;;  %v785_v9 = vadd.f32 %v1124_v4, %v407_v0 }
 0x13b   : > { %v1102_v10 = vpop.f32.mrf.mxu0  ;;  %v1126_v11 = vpop.f32.mrf.mxu1 }
 0x13c   : > { %v844_v13 = vmul.f32 %v812_v5, %v777_v53  ;;  %v852_v14 = vmul.f32 %v820_v6, %v785_v9  ;;  %v1103_v15 = vadd.f32 %v1102_v10, %v1101_v7  ;;  %v1127_v16 = vadd.f32 %v1126_v11, %v1125_v8 }
 0x13d   : > { %v1104_v19 = vpop.f32.mrf.mxu0  ;;  %v1128_v20 = vpop.f32.mrf.mxu1 }
 0x13e   : > { %860 = vst [vmem:[%s1631_s9 + $0x28] sm:$0xff] %v844_v13  ;;  %868 = vst [vmem:[%s1631_s9 + $0x68] sm:$0xff] %v852_v14  ;;  %v778_v54 = vadd.f32 %v1103_v15, %v1621_v55  ;;  %v786_v21 = vadd.f32 %v1127_v16, %v412_v12 }
 0x13f   : > { %v1105_v22 = vpop.f32.mrf.mxu0  ;;  %v1129_v23 = vpop.f32.mrf.mxu1 }
 0x140   : > { %v845_v24 = vmul.f32 %v813_v17, %v778_v54  ;;  %v853_v25 = vmul.f32 %v821_v18, %v786_v21  ;;  %v1106_v26 = vadd.f32 %v1105_v22, %v1104_v19  ;;  %v1130_v27 = vadd.f32 %v1129_v23, %v1128_v20 }
 0x142   : > { %861 = vst [vmem:[%s1631_s9 + $0x30] sm:$0xff] %v845_v24  ;;  %869 = vst [vmem:[%s1631_s9 + $0x70] sm:$0xff] %v853_v25  ;;  %v779_v55 = vadd.f32 %v1106_v26, %v1623_v58  ;;  %v787_v31 = vadd.f32 %v1130_v27, %v417_v28 }
 0x144   : > { %v846_v32 = vmul.f32 %v814_v29, %v779_v55  ;;  %v854_v33 = vmul.f32 %v822_v30, %v787_v31 }
 0x146   : > { %862 = vst [vmem:[%s1631_s9 + $0x38] sm:$0xff] %v846_v32  ;;  %870 = vst [vmem:[%s1631_s9 + $0x78] sm:$0xff] %v854_v33 }
 0x147   : > { %1337 = shalt.err (!%p1334_p1)
}
 0x148   : > { %s1338_s20 = scalar_lea.hbm %s1668_s13, 2048  ;;  %s1342_s27 = scalar_lea.hbm %s1724_s4, 4096 }
 0x149   : > { %p1339_p5 = scmp.ne.s32.totalorder %s1668_s13, %s1338_s20  ;;  %p1343_p11 = scmp.lt.s32.totalorder %s1668_s13, %s1724_s4 }
 0x14a   : > { %p1344_p13 = scmp.lt.s32.totalorder %s1342_s27, %s1338_s20 }
 0x14b   : > { %p1340_p7 = pnand %p1339_p5, %p1743_p2 }
 0x14c   : > { %p1345_p12 = por %p1344_p13, %p1343_p11 }
 0x14d   : > { %p1341_p9 = pneg %p1340_p7 }
 0x14f   : > { %p1346_p3 = pnand %p1345_p12, %p1341_p9 }
 0x151   : > { %1349 = shalt.err (!%p1346_p3)
}
 0x152   : > { %s1419_s5 = smov 128   ;;  %s1420_s30 = smov 8  }
 0x153   : > { %1153 = dma.vmem_to_hbm [thread:$0]  (%p1743_p2), %s1670_s11, 2048, %s1668_s13, %s872_s18, %s1419_s5, %s1419_s5, %s1420_s30  }
 0x154 PF: > { %s1744_s9 = sld [smem:[#allocation12_spill]] }
 0x155   : > { %s1745_s10 = sld [smem:[#allocation14_spill]] }
 0x156   : > { %s1746_s12 = sld [smem:[#allocation13_spill]] }
 0x15a   : > { %s900_s21 = sand.u32 1, %s1744_s9  }
 0x15b   : > { %p1747_p4 = scmp.ne.s32.totalorder %s1745_s10, 0  ;;  %s901_s22 = scalar_lea.sflag [#allocation5], %s900_s21 }
 0x15c   : > { %p1748_p6 = scmp.ge.s32.totalorder %s1746_s12, 2 }
 0x15e   : > { %p1164_p8 = pnand %p1748_p6, %p1747_p4 }
 0x160   : > { %p1165_p10 = pneg %p1164_p8 }
 0x162   : > { %1383 = dma.done.wait (%p1165_p10), %s901_s22, 2048  }
 0x163   : > { %1385 = vsyncadd (%p1165_p10), %s901_s22, 4294965248  ;;  %s21_s20 = sadd.s32 1, %s1746_s12   ;;  %s1749_s26 = smov %s1546_s15 }
 0x164   : > { %p18_p0 = scmp.ge.s32.totalorder %s21_s20, 4   ;;  %s1750_s15 = smov %s1392_s16 }
 0x165   : > { %s1751_s16 = smov %s1396_s17  ;;  %s1752_s17 = smov %s1749_s26 }
 0x166   : > { %s1753_s18 = smov %s1404_s19  ;;  %s1754_s19 = smov %s1756_s7 }
 0x167   :  { %20 = sbr.rel (!%p18_p0) target bundleno = 7 (0x7), region = 100 }
 0x16c   :  { %906 = vsyncpa [#allocation4], 1 }
 0x16d   :  { %908 = vsyncpa [#allocation4 + $0x1], 1 }
 0x16e   :  { %909 = vsyncpa [#allocation7], 1 }
 0x16f   :  { %910 = vsyncpa [#allocation5], 1 }
 0x170   :  { %912 = vsyncpa [#allocation5 + $0x1], 1 }

</bundles_post_ra>
